<compile_context>
chip_gen: v6e
topology: v6e:2x2x1
jax: 0.10.0
libtpu: 0.0.40
codegen_flags: <defaults>
</compile_context>

<pallas_src>
import jax
import jax.numpy as jnp
from jax.experimental import pallas as pl
from jax.experimental.pallas import tpu as pltpu


def _round_up(x, m):
    return (x + m - 1) // m * m


def _feat_exemplar_avg_kernel(labels_t_ref, feats_ref, out_ref, acc_ref, cnt_ref):
    # labels_t_ref: (K, TILE_N)   feats_ref: (TILE_N, TILE_D)
    # out_ref:      (K, TILE_D)   acc_ref:  (K, TILE_D) f32    cnt_ref: (K, 1) f32
    n = pl.program_id(2)

    @pl.when(n == 0)
    def _init():
        acc_ref[...] = jnp.zeros_like(acc_ref)
        cnt_ref[...] = jnp.zeros_like(cnt_ref)

    lt = labels_t_ref[...]              # native dtype (bf16 in production)
    f = feats_ref[...]
    if lt.dtype != f.dtype:             # trace-time branch
        lt = lt.astype(f.dtype)

    # per-class summed features: MXU matmul with f32 accumulation
    acc_ref[...] += jnp.dot(lt, f, preferred_element_type=jnp.float32)
    # per-class example counts, accumulated exactly in f32 (one-hot safe)
    cnt_ref[...] += jnp.sum(lt.astype(jnp.float32), axis=1, keepdims=True)

    @pl.when(n == pl.num_programs(2) - 1)
    def _finalize():
        # NOTE: a class with zero examples yields NaN (0 * inf), matching
        # the PyTorch module's 0/0 behaviour.
        inv = pl.reciprocal(cnt_ref[...], approx=False)          # (K, 1)
        out_ref[...] = (acc_ref[...] * inv).astype(out_ref.dtype)


def feat_exemplar_avg_block(features_train, labels_train, *,
                            max_tile_n=512, max_tile_d=512):
    """features_train: (B, N, D), labels_train: (B, N, K) -> (B, K, D)."""
    B, N, D = features_train.shape
    Bl, Nl, K = labels_train.shape
    assert (Bl, Nl) == (B, N)
    out_dtype = features_train.dtype

    # --- tile / padding choices --------------------------------------------
    # D (lane dim of features & output): multiple of 128 -> lane-dense stores.
    tile_d = min(max_tile_d, _round_up(D, 128))
    d_pad = _round_up(D, tile_d)
    # N (reduction dim): one full-N block when small, else 128-multiple tiles.
    if N <= max_tile_n:
        tile_n = _round_up(N, 8)
        n_pad = tile_n
    else:
        tile_n = max_tile_n                 # multiple of 128
        n_pad = _round_up(N, tile_n)

    feats = features_train
    labels = labels_train
    if d_pad != D:
        feats = jnp.pad(feats, ((0, 0), (0, 0), (0, d_pad - D)))
    if n_pad != N:
        # zero-padded rows contribute nothing to the matmul nor to the counts
        feats = jnp.pad(feats, ((0, 0), (0, n_pad - N), (0, 0)))
        labels = jnp.pad(labels, ((0, 0), (0, n_pad - N), (0, 0)))

    # glue: (B, N, K) -> (B, K, N) so the kernel hot path is an NN matmul.
    labels_t = jnp.swapaxes(labels, 1, 2)

    grid = (B, d_pad // tile_d, n_pad // tile_n)

    # explicit VMEM budget: double-buffered blocks + scratch + headroom
    blk_bytes = (K * tile_n * labels_t.dtype.itemsize
                 + tile_n * tile_d * feats.dtype.itemsize
                 + K * tile_d * jnp.dtype(out_dtype).itemsize)
    scratch_bytes = max(K, 8) * tile_d * 4 + max(K, 8) * 128 * 4
    vmem_limit = int(min(max(2 * blk_bytes + scratch_bytes + (2 << 20), 8 << 20),
                         64 << 20))

    out = pl.pallas_call(
        _feat_exemplar_avg_kernel,
        out_shape=jax.ShapeDtypeStruct((B, K, d_pad), out_dtype),
        grid_spec=pltpu.PrefetchScalarGridSpec(
            num_scalar_prefetch=0,
            grid=grid,
            in_specs=[
                pl.BlockSpec((None, K, tile_n), lambda b, d, n: (b, 0, n)),
                pl.BlockSpec((None, tile_n, tile_d), lambda b, d, n: (b, n, d)),
            ],
            out_specs=pl.BlockSpec((None, K, tile_d), lambda b, d, n: (b, 0, d)),
            scratch_shapes=[
                pltpu.VMEM((K, tile_d), jnp.float32),   # per-class feature sums
                pltpu.VMEM((K, 1), jnp.float32),        # per-class counts
            ],
        ),
        compiler_params=pltpu.CompilerParams(
            dimension_semantics=("parallel", "parallel", "arbitrary"),
            vmem_limit_bytes=vmem_limit,
        ),
    )(labels_t, feats)

    if d_pad != D:
        out = out[:, :, :D]
    return out


def _reference(features_train, labels_train):
    labels_t = jnp.swapaxes(labels_train, 1, 2)          # (B, K, N)
    w = jnp.einsum("bkn,bnd->bkd", labels_t, features_train,
                   precision=jax.lax.Precision.HIGHEST)
    counts = jnp.sum(labels_t, axis=2, keepdims=True)    # (B, K, 1)
    return w / counts


if __name__ == "__main__":
    key = jax.random.PRNGKey(0)
    kf, _ = jax.random.split(key)

    # batch, train examples, feature dim, classes (N, D deliberately not
    # multiples of 8 / 128 to exercise the padding paths)
    B, N, D, K = 2, 10, 32, 4

    features_train = jax.random.normal(kf, (B, N, D), dtype=jnp.float32)

    # deterministic one-hot labels: cycle classes so every class has >=1 example
    class_ids = jnp.arange(N) % K                        # (N,)
    labels_train = jax.nn.one_hot(class_ids, K, dtype=jnp.float32)
    labels_train = jnp.broadcast_to(labels_train, (B, N, K))

    out = feat_exemplar_avg_block(features_train, labels_train)
    out = jax.block_until_ready(out)

    ref = _reference(features_train, labels_train)
    assert out.shape == (B, K, D)
    assert jnp.allclose(out, ref, atol=1e-4, rtol=1e-4), float(
        jnp.max(jnp.abs(out - ref)))

    print("KERNEL_OK")
</pallas_src>

<mosaic_0001>
module attributes {stable_mosaic.version = 11 : i64} {
  func.func @_feat_exemplar_avg_kernel(%arg0: i32, %arg1: i32, %arg2: i32, %arg3: memref<1x4x16xf32, #tpu.memory_space<vmem>>, %arg4: memref<1x16x128xf32, #tpu.memory_space<vmem>>, %arg5: memref<1x4x128xf32, #tpu.memory_space<vmem>>, %arg6: memref<4x128xf32, #tpu.memory_space<vmem>>, %arg7: memref<4x1xf32, #tpu.memory_space<vmem>>) attributes {dimension_semantics = [#tpu.dimension_semantics<parallel>, #tpu.dimension_semantics<parallel>, #tpu.dimension_semantics<arbitrary>], iteration_bounds = array<i64: 2, 1, 1>, scalar_prefetch = 0 : i64, scratch_operands = 2 : i64, tpu.core_type = #tpu.core_type<tc>, window_params = [{transform_indices = @transform_0, window_bounds = array<i64: 1, 4, 16>}, {transform_indices = @transform_1, window_bounds = array<i64: 1, 16, 128>}, {transform_indices = @transform_2, window_bounds = array<i64: 1, 4, 128>}]} {
    %c0_i32 = arith.constant 0 : i32
    %0 = arith.cmpi eq, %arg2, %c0_i32 : i32
    %1 = arith.extui %0 : i1 to i32
    %c0_i32_0 = arith.constant 0 : i32
    %2 = arith.cmpi ne, %1, %c0_i32_0 : i32
    scf.if %2 {
      %cst_17 = arith.constant 0.000000e+00 : f32
      %19 = vector.broadcast %cst_17 : f32 to vector<4x128xf32>
      %c0_18 = arith.constant 0 : index
      %c0_19 = arith.constant 0 : index
      %20 = vector.load %arg6[%c0_18, %c0_19] : memref<4x128xf32, #tpu.memory_space<vmem>>, vector<4x128xf32>
      tpu.vector_store %arg6[%c0_18, %c0_19], %19 {strides = array<i32>} : memref<4x128xf32, #tpu.memory_space<vmem>>, vector<4x128xf32>,
      %cst_20 = arith.constant 0.000000e+00 : f32
      %21 = vector.broadcast %cst_20 : f32 to vector<4x1xf32>
      %c0_21 = arith.constant 0 : index
      %c0_22 = arith.constant 0 : index
      %22 = vector.load %arg7[%c0_21, %c0_22] : memref<4x1xf32, #tpu.memory_space<vmem>>, vector<4x1xf32>
      tpu.vector_store %arg7[%c0_21, %c0_22], %21 {strides = array<i32>} : memref<4x1xf32, #tpu.memory_space<vmem>>, vector<4x1xf32>,
    } else {
    }
    %c0 = arith.constant 0 : index
    %c0_1 = arith.constant 0 : index
    %c0_2 = arith.constant 0 : index
    %3 = vector.load %arg3[%c0, %c0_1, %c0_2] : memref<1x4x16xf32, #tpu.memory_space<vmem>>, vector<1x4x16xf32>
    %4 = vector.shape_cast %3 : vector<1x4x16xf32> to vector<4x16xf32>
    %c0_3 = arith.constant 0 : index
    %c0_4 = arith.constant 0 : index
    %c0_5 = arith.constant 0 : index
    %5 = vector.load %arg4[%c0_3, %c0_4, %c0_5] : memref<1x16x128xf32, #tpu.memory_space<vmem>>, vector<1x16x128xf32>
    %6 = vector.shape_cast %5 : vector<1x16x128xf32> to vector<16x128xf32>
    %c0_6 = arith.constant 0 : index
    %c0_7 = arith.constant 0 : index
    %7 = vector.load %arg6[%c0_6, %c0_7] : memref<4x128xf32, #tpu.memory_space<vmem>>, vector<4x128xf32>
    %cst = arith.constant dense<0.000000e+00> : vector<4x128xf32>
    %8 = tpu.matmul %4, %6, %cst {dimension_numbers = #tpu.dot_dimension_numbers<[1], [0], [0], [1], [0, 0, 1, 1], [], []>} : vector<4x16xf32>, vector<16x128xf32>, vector<4x128xf32> -> vector<4x128xf32>
    %9 = arith.addf %7, %8 : vector<4x128xf32>
    %c0_8 = arith.constant 0 : index
    %c0_9 = arith.constant 0 : index
    %10 = vector.load %arg6[%c0_8, %c0_9] : memref<4x128xf32, #tpu.memory_space<vmem>>, vector<4x128xf32>
    tpu.vector_store %arg6[%c0_8, %c0_9], %9 {strides = array<i32>} : memref<4x128xf32, #tpu.memory_space<vmem>>, vector<4x128xf32>,
    %c0_10 = arith.constant 0 : index
    %c0_11 = arith.constant 0 : index
    %11 = vector.load %arg7[%c0_10, %c0_11] : memref<4x1xf32, #tpu.memory_space<vmem>>, vector<4x1xf32>
    %cst_12 = arith.constant dense<0.000000e+00> : vector<4xf32>
    %12 = vector.multi_reduction <add>, %4, %cst_12 [1] : vector<4x16xf32> to vector<4xf32>
    %13 = vector.shape_cast %12 : vector<4xf32> to vector<4x1xf32>
    %14 = arith.addf %11, %13 : vector<4x1xf32>
    %c0_13 = arith.constant 0 : index
    %c0_14 = arith.constant 0 : index
    %15 = vector.load %arg7[%c0_13, %c0_14] : memref<4x1xf32, #tpu.memory_space<vmem>>, vector<4x1xf32>
    tpu.vector_store %arg7[%c0_13, %c0_14], %14 {strides = array<i32>} : memref<4x1xf32, #tpu.memory_space<vmem>>, vector<4x1xf32>,
    %c0_i32_15 = arith.constant 0 : i32
    %16 = arith.cmpi eq, %arg2, %c0_i32_15 : i32
    %17 = arith.extui %16 : i1 to i32
    %c0_i32_16 = arith.constant 0 : i32
    %18 = arith.cmpi ne, %17, %c0_i32_16 : i32
    scf.if %18 {
      %c0_17 = arith.constant 0 : index
      %c0_18 = arith.constant 0 : index
      %19 = vector.load %arg7[%c0_17, %c0_18] : memref<4x1xf32, #tpu.memory_space<vmem>>, vector<4x1xf32>
      %20 = tpu.reciprocal %19 : vector<4x1xf32> -> vector<4x1xf32>
      %c0_19 = arith.constant 0 : index
      %c0_20 = arith.constant 0 : index
      %21 = vector.load %arg6[%c0_19, %c0_20] : memref<4x128xf32, #tpu.memory_space<vmem>>, vector<4x128xf32>
      %22 = vector.broadcast %20 : vector<4x1xf32> to vector<4x128xf32>
      %23 = arith.mulf %21, %22 : vector<4x128xf32>
      %c0_21 = arith.constant 0 : index
      %c0_22 = arith.constant 0 : index
      %c0_23 = arith.constant 0 : index
      %24 = vector.load %arg5[%c0_21, %c0_22, %c0_23] : memref<1x4x128xf32, #tpu.memory_space<vmem>>, vector<1x4x128xf32>
      %25 = vector.shape_cast %24 : vector<1x4x128xf32> to vector<4x128xf32>
      %26 = vector.shape_cast %23 : vector<4x128xf32> to vector<1x4x128xf32>
      tpu.vector_store %arg5[%c0_21, %c0_22, %c0_23], %26 {strides = array<i32>} : memref<1x4x128xf32, #tpu.memory_space<vmem>>, vector<1x4x128xf32>,
    } else {
    }
    return
  }
  func.func @transform_0(%arg0: i32, %arg1: i32, %arg2: i32) -> (i32, i32, i32) {
    %c0_i32 = arith.constant 0 : i32
    %c0_i32_0 = arith.constant 0 : i32
    return %arg0, %c0_i32, %arg2 : i32, i32, i32
  }
  func.func @transform_1(%arg0: i32, %arg1: i32, %arg2: i32) -> (i32, i32, i32) {
    %c0_i32 = arith.constant 0 : i32
    return %arg0, %arg2, %arg1 : i32, i32, i32
  }
  func.func @transform_2(%arg0: i32, %arg1: i32, %arg2: i32) -> (i32, i32, i32) {
    %c0_i32 = arith.constant 0 : i32
    %c0_i32_0 = arith.constant 0 : i32
    return %arg0, %c0_i32, %arg1 : i32, i32, i32
  }
}

</mosaic_0001>

<bundles_post_ra>
// kernel: tpu_custom_call.1
= control target key start
LH: loop header
LB: loop body
LE: loop exit
PB: predicated region body
PF: predicated region fallthrough
CT: control target
= control target key end

     0   :  { %7 = vsyncpa [#allocation5], 0  ;;  %s903_s0 = inlined_call_operand.hbm [shape: f32[2,4,16], index: 0, kind: input, shape index: {}]   ;;  %s904_s1 = inlined_call_operand.hbm [shape: f32[2,16,128], index: 1, kind: input, shape index: {}]   ;;  %s905_s2 = inlined_call_operand.hbm [shape: f32[2,4,128], index: 2, kind: output, shape index: {}]  }
   0x1   :  { %9 = vsyncpa [#allocation5 + $0x1], 0 }
   0x2   :  { %10 = vsyncpa [#allocation8], 0 }
   0x3   :  { %12 = vsyncpa [#allocation8 + $0x1], 0 }
   0x4   :  { %13 = vsyncpa [#allocation6], 0 }
   0x5   :  { %15 = vsyncpa [#allocation6 + $0x1], 0  ;;  %s733_s9 = smov 0   ;;  %s735_s10 = smov 0  }
   0x6   :  { %s737_s11 = smov 0   ;;  %s739_s12 = smov 0  }
   0x7   :  { %s741_s13 = smov 0   ;;  %s743_s14 = smov 0  }
   0x8 LB: > { %s464_s15 = sadd.s32 4294967295, %s708_s14   ;;  %s465_s16 = sadd.s32 4294967294, %s708_s14   ;;  %s708_s14 = sphi %s743_s14, %s21_s14   ;;  %s704_s13 = sphi %s741_s13, %s917_s13   ;;  %s700_s12 = sphi %s739_s12, %s916_s12   ;;  %s696_s11 = sphi %s737_s11, %s915_s11   ;;  %s692_s10 = sphi %s735_s10, %s914_s10   ;;  %s688_s9 = sphi %s733_s9, %s913_s9  }
   0x9   : > { %s40_s17 = sadd.s32 1, %s704_s13  ;;  %s49_s18 = sadd.s32 1, %s696_s11 }
   0xa   : > { %p42_p0 = scmp.ge.s32.totalorder %s40_s17, 2  ;;  %p56_p1 = scmp.ne.s32.totalorder %s696_s11, %s692_s10 }
   0xb   : > { %p57_p2 = scmp.eq.s32.totalorder %s708_s14, 0  ;;  %p62_p3 = scmp.ne.s32.totalorder %s692_s10, %s688_s9 }
   0xc   : > { %s919_s17 = smov (%p42_p0, %s40_s17), 0  ;;  %p63_p5 = scmp.eq.s32.totalorder %s464_s15, 0 }
   0xd   : > { %p774_p4 = por %p57_p2, %p56_p1  ;;  %s44_s20 = ssub.s32 %s704_s13, %s919_s17 }
   0xe   : > { %p118_p6 = scmp.eq.s32.totalorder %s464_s15, 1  ;;  %p47_p7 = scmp.eq.s32.totalorder %s44_s20, 0 }
   0xf   : > { %p780_p8 = por %p63_p5, %p62_p3  ;;  %p124_p10 = scmp.eq.s32.totalorder %s465_s16, 1 }
  0x10   : > { %p784_p9 = por %p118_p6, %p56_p1  ;;  %p510_p13 = scmp.lt.s32.totalorder %s708_s14, 2 }
  0x11   : > { %s789_s23 = scalar_select %p47_p7, %s696_s11, %s49_s18  }
  0x12   : > { %p791_p11 = por %p124_p10, %p62_p3  ;;  %s798_s25 = sand.u32 1, %s696_s11  }
  0x13   : > { %s468_s26 = sshll.u32 %s798_s25, 2  ;;  %s469_s27 = sshll.u32 %s704_s13, 6 }
  0x14   : > { %s154_s30 = scalar_lea.hbm %s903_s0, %s469_s27  ;;  %s148_s3 = scalar_lea.vmem [#allocation4], %s468_s26 }
  0x15   : > { %s156_s4 = sshll.u32 %s148_s3, 4  ;;  %p807_p0 = pnand %p510_p13, %p774_p4  ;;  %s157_s4 = int_to_ptr.vmem [resolvable:$true] %s156_s4 }
  0x16   : > { %p473_p1 = scmp.ge.s32.totalorder %s708_s14, 1  ;;  %p185_p2 = scmp.lt.s32.totalorder %s708_s14, 3 }
  0x17   : > { %s145_s6 = scalar_lea.sflag [#allocation5], %s798_s25  ;;  %p570_p3 = pneg %p807_p0 }
  0x18   : > { %s581_s7 = scalar_lea.vmem %s157_s4, 64  ;;  %s710_s8 = smov [#allocation4]  }
  0x19   : > { %p582_p5 = scmp.ne.s32.totalorder %s157_s4, %s581_s7  ;;  %s586_s15 = sshll.u32 %s710_s8, 4  ;;  %s587_s15 = int_to_ptr.vmem [resolvable:$false] %s586_s15 }
  0x1a   : > { %s588_s16 = scalar_lea.vmem %s587_s15, 128  ;;  %p589_p4 = scmp.lt.s32.totalorder %s157_s4, %s587_s15 }
  0x1b   : > { %p584_p6 = pnand %p582_p5, %p570_p3  ;;  %p590_p10 = scmp.lt.s32.totalorder %s588_s16, %s581_s7 }
  0x1d   : > { %p585_p7 = pneg %p584_p6  ;;  %p591_p13 = por %p590_p10, %p589_p4 }
  0x1f   : > { %p592_p12 = pnand %p591_p13, %p585_p7 }
  0x21   : > { %595 = shalt.err (!%p592_p12)
}
  0x22   : > { %502 = dma.hbm_to_vmem [thread:$0]  (!%p807_p0), %s154_s30, 64, %s157_s4, %s145_s6  }
  0x23   : > { %p825_p5 = pnand %p473_p1, %p185_p2  ;;  %s470_s19 = sshll.u32 %s798_s25, 4 }
  0x24   : > { %s482_s20 = sshll.u32 %s704_s13, 8  ;;  %s167_s29 = scalar_lea.vmem [#allocation7], %s470_s19 }
  0x25   : > { %s176_s28 = scalar_lea.hbm %s904_s1, %s482_s20  ;;  %s177_s3 = sshll.u32 %s167_s29, 4  ;;  %s178_s3 = int_to_ptr.vmem [resolvable:$true] %s177_s3 }
  0x26   : > { %s164_s7 = scalar_lea.sflag [#allocation8], %s798_s25  ;;  %s609_s8 = scalar_lea.vmem %s178_s3, 256 }
  0x27   : > { %p610_p12 = scmp.ne.s32.totalorder %s178_s3, %s609_s8  ;;  %s711_s30 = smov [#allocation7]  }
  0x28   : > { %s614_s4 = sshll.u32 %s711_s30, 4  ;;  %s615_s4 = int_to_ptr.vmem [resolvable:$false] %s614_s4 }
  0x29   : > { %p612_p6 = pnand %p610_p12, %p570_p3  ;;  %s616_s6 = scalar_lea.vmem %s615_s4, 512 }
  0x2a   : > { %p617_p1 = scmp.lt.s32.totalorder %s178_s3, %s615_s4  ;;  %p618_p2 = scmp.lt.s32.totalorder %s616_s6, %s609_s8 }
  0x2b   : > { %p613_p7 = pneg %p612_p6 }
  0x2c   : > { %p619_p4 = por %p618_p2, %p617_p1 }
  0x2e   : > { %p620_p10 = pnand %p619_p4, %p613_p7 }
  0x30   : > { %623 = shalt.err (!%p620_p10)
}
  0x31   : > { %s712_s15 = smov 128   ;;  %s713_s16 = smov 8  }
  0x32   : > { %505 = dma.hbm_to_vmem [thread:$0]  (!%p807_p0), %s176_s28, 256, %s178_s3, %s164_s7, %s712_s15, %s712_s15, %s713_s16  }
  0x33   : > { %189 = sbr.rel (%p825_p5) target bundleno = 364 (0x16c), region = 28  ;;  %s843_s25 = sand.u32 (!%p825_p5), 1, %s692_s10  }
  0x34   : > { %s474_s19 = sshll.u32 (!%p825_p5), %s843_s25, 2  ;;  %s192_s20 = scalar_lea.sflag (!%p825_p5), [#allocation5], %s843_s25 }
  0x35   : > { %s195_s26 = scalar_lea.vmem (!%p825_p5), [#allocation4], %s474_s19 }
  0x38   : > { %675 = dma.done.wait (%p780_p8), %s192_s20, 64  }
  0x39   : > { %677 = vsyncadd (%p780_p8), %s192_s20, 4294967232  ;;  %s475_s5 = sshll.u32 %s843_s25, 4  ;;  %s201_s18 = scalar_lea.sflag [#allocation8], %s843_s25 }
  0x3a   : > { %s204_s27 = scalar_lea.vmem [#allocation7], %s475_s5 }
  0x3b   : > { %679 = dma.done.wait (%p780_p8), %s201_s18, 256  }
  0x3c   : > { %681 = vsyncadd (%p780_p8), %s201_s18, 4294967040  ;;  %vm236_vm0 = vcmask 3072   ;;  %v714_v0 = vmov 0.0   ;;  %vm715_vm1 = vmmov 0   ;;  %vm319_vm2 = vcmask 125952   ;;  %v240_v2 = vld [vmem:[%s204_s27 + $0x8] sm:$0xff] }
  0x3d   : > { %237 = vst.msk [vmem:[#allocation3] sm:$0xf] %vm236_vm0, %v714_v0  ;;  %486 = vmatprep.subr.mxu0 %v714_v0  ;;  %235 = vst [vmem:[#allocation2] sm:$0xf] %v714_v0  ;;  %490 = vmatprep.mubr.msk.f32.mxu0 %vm715_vm1, %v714_v0  ;;  %v238_v1 = vld [vmem:[%s195_s26] sm:$0xf] }
  0x3e   : > { %v239_v3 = vld [vmem:[%s204_s27] sm:$0xff]  ;;  %v320_v4 = vsel %vm319_vm2, %v238_v1, 0.0  ;;  %487 = vmatpush3.msra.mxu0 %v240_v2  ;;  %vm242_vm3 = vcmask 130048   ;;  %v716_v5 = vmov 0   ;;  %s479_s21 = sshll.u32 %s700_s12, 6  ;;  %s229_s28 = scalar_lea.vmem [#allocation9], %s474_s19 }
  0x3f   : > { %321 = vadd.xlane.f32.xlu0 %v320_v4  ;;  %488 = vmatprep.subr.mxu0 %v714_v0  ;;  %s354_s29 = sshll.u32 %s229_s28, 4  ;;  %s352_s8 = scalar_lea.hbm %s905_s2, %s479_s21  ;;  %s355_s29 = int_to_ptr.vmem [resolvable:$true] %s354_s29 }
  0x40   : > { %489 = vmatpush3.msra.mxu0 %v239_v3  ;;  %565 = vset.pattern.permute.xlu0 %v716_v5  ;;  %s340_s30 = scalar_lea.sflag [#allocation6], %s843_s25  ;;  %s624_s4 = scalar_lea.vmem %s355_s29, 64 }
  0x41   : > { %491 = vmatmul.mubr.msk.f32.vlgmr.msra.gmra.mxu0 %vm242_vm3, %v238_v1  ;;  %p625_p8 = scmp.ne.s32.totalorder %s355_s29, %s624_s4  ;;  %s717_s6 = smov [#allocation9]  }
  0x42   : > { %s628_s15 = sshll.u32 %s717_s6, 4  ;;  %s629_s15 = int_to_ptr.vmem [resolvable:$false] %s628_s15 }
  0x43   : > { %p626_p0 = pnand %p625_p8, %p784_p9  ;;  %s630_s12 = scalar_lea.vmem %s629_s15, 128 }
  0x44   : > { %v318_v6 = vld [vmem:[#allocation3] sm:$0xf]  ;;  %v241_v11 = vld [vmem:[#allocation2] sm:$0xf]  ;;  %p631_p13 = scmp.lt.s32.totalorder %s355_s29, %s629_s15  ;;  %p632_p5 = scmp.lt.s32.totalorder %s630_s12, %s624_s4 }
  0x45   : > { %p627_p3 = pneg %p626_p0 }
  0x46   : > { %p633_p12 = por %p632_p5, %p631_p13 }
  0x48   : > { %p634_p6 = pnand %p633_p12, %p627_p3 }
  0xc8   : > { %v322_v7 = vpop.xlane.xlu0 %321 }
  0xc9   : > { %v323_v8 = vadd.f32 %v322_v7, %v318_v6 }
  0xcb   : > { %325 = vst.msk [vmem:[#allocation3] sm:$0xf] %vm236_vm0, %v323_v8 }
  0xd2   : > { %v329_v9 = vld [vmem:[#allocation3] sm:$0xf] }
  0xd3   : > { %566 = vrcp.f32 %v329_v9 }
  0xe0   : > { %v567_v10 = vpop.eup %566 }
  0xe1   : > { %334 = vperm.xlu0 %565, %v567_v10  }
 0x101   : > { %v312_v12 = vpop.f32.mrf.mxu0 }
 0x102   : > { %v316_v13 = vadd.f32 %v312_v12, %v241_v11 }
 0x103   : > { %v492_v14 = vpop.f32.mrf.mxu0 }
 0x104   : > { %317 = vst [vmem:[#allocation2] sm:$0xf] %v316_v13 }
 0x10b   : > { %v331_v15 = vld [vmem:[#allocation2] sm:$0xf] }
 0x15c   : > { %v335_v16 = vpop.permute.xlu0 %334 }
 0x15d   : > { %v337_v17 = vmul.f32 %v335_v16, %v331_v15 }
 0x15f   : > { %338 = vst [vmem:[%s229_s28] sm:$0xf] %v337_v17 }
 0x160   : > { %637 = shalt.err (!%p634_p6)
}
 0x161   : > { %s638_s16 = scalar_lea.hbm %s352_s8, 64  ;;  %s642_s20 = scalar_lea.hbm %s905_s2, 128 }
 0x162   : > { %p639_p7 = scmp.ne.s32.totalorder %s352_s8, %s638_s16  ;;  %p643_p4 = scmp.lt.s32.totalorder %s352_s8, %s905_s2 }
 0x163   : > { %p644_p10 = scmp.lt.s32.totalorder %s642_s20, %s638_s16 }
 0x164   : > { %p640_p1 = pnand %p639_p7, %p784_p9 }
 0x165   : > { %p645_p8 = por %p644_p10, %p643_p4 }
 0x166   : > { %p641_p2 = pneg %p640_p1 }
 0x168   : > { %p646_p0 = pnand %p645_p8, %p641_p2 }
 0x16a   : > { %649 = shalt.err (!%p646_p0)
}
 0x16b   : > { %497 = dma.vmem_to_hbm [thread:$0]  (%p784_p9), %s355_s29, 64, %s352_s8, %s340_s30  }
 0x16c PF: > { %s366_s18 = sand.u32 1, %s688_s9   ;;  %p912_p3 = scmp.ge.s32.totalorder %s708_s14, 2 }
 0x16d   : > { %s367_s27 = scalar_lea.sflag [#allocation6], %s366_s18 }
 0x16e   : > { %p507_p13 = pnand %p912_p3, %p791_p11 }
 0x170   : > { %p508_p5 = pneg %p507_p13 }
 0x172   : > { %683 = dma.done.wait (%p508_p5), %s367_s27, 64  }
 0x173   : > { %685 = vsyncadd (%p508_p5), %s367_s27, 4294967232  ;;  %s21_s14 = sadd.s32 1, %s708_s14   ;;  %s913_s9 = smov %s692_s10 }
 0x174   : > { %p18_p12 = scmp.ge.s32.totalorder %s21_s14, 4   ;;  %s914_s10 = smov %s696_s11 }
 0x175   : > { %s915_s11 = smov %s789_s23  ;;  %s916_s12 = smov %s704_s13 }
 0x176   : > { %s917_s13 = smov %s919_s17  ;;  %20 = sbr.rel (!%p18_p12) target bundleno = 8 (0x8), region = 94 }
 0x17b   :  { %372 = vsyncpa [#allocation5], 1 }
 0x17c   :  { %374 = vsyncpa [#allocation5 + $0x1], 1 }
 0x17d   :  { %375 = vsyncpa [#allocation8], 1 }
 0x17e   :  { %377 = vsyncpa [#allocation8 + $0x1], 1 }
 0x17f   :  { %378 = vsyncpa [#allocation6], 1 }
 0x180   :  { %380 = vsyncpa [#allocation6 + $0x1], 1 }

</bundles_post_ra>
